<compile_context>
chip_gen: v7x
topology: tpu7x:2x2x1
jax: 0.10.0
libtpu: 0.0.40
codegen_flags: <defaults>
</compile_context>

<pallas_src>
import jax
import jax.numpy as jnp
from jax.experimental import pallas as pl
from jax.experimental.pallas import tpu as pltpu


# ----------------------------- device helpers --------------------------------

def _device_kind():
    try:
        return jax.devices()[0].device_kind.lower()
    except Exception:
        return ""


def _is_v7x():
    return "v7" in _device_kind()


def _mxu_lane_tile():
    # v5-family MXU tile is 128 wide; v6e / v7x are 256.
    return 128 if "v5" in _device_kind() else 256


def _round_up(x, m):
    return ((x + m - 1) // m) * m


# ----------------------------- kernel bodies ---------------------------------

_NT = (((1,), (1,)), ((), ()))   # contract last dims of both operands (A @ B^T)


def _make_kernel(split_l2, W):
    """Kernel factory. `split_l2` / `W` are static (Python) parameters."""
    if split_l2:
        # layer 2 as two dense (W,W) matmuls (no zero blocks on the MXU).
        def kernel(s_ref, a_ref, w1s_ref, w1a_ref, b1_ref,
                   w2a_ref, w2b_ref, b2_ref, w3t_ref, b3_ref, out_ref):
            s = s_ref[...].astype(jnp.bfloat16)
            a = a_ref[...].astype(jnp.bfloat16)
            # fused layer 1 (both heads): (TB, 2W), f32 acc, f32 bias/ReLU
            h = (jnp.dot(s, w1s_ref[...], preferred_element_type=jnp.float32)
                 + jnp.dot(a, w1a_ref[...], preferred_element_type=jnp.float32)
                 + b1_ref[...])
            h = jnp.maximum(h, 0.0).astype(jnp.bfloat16)
            b2 = b2_ref[...]
            g1 = jnp.dot(h[:, :W], w2a_ref[...],
                         preferred_element_type=jnp.float32) + b2[:, :W]
            g2 = jnp.dot(h[:, W:], w2b_ref[...],
                         preferred_element_type=jnp.float32) + b2[:, W:]
            g1 = jnp.maximum(g1, 0.0).astype(jnp.bfloat16)
            g2 = jnp.maximum(g2, 0.0).astype(jnp.bfloat16)
            # layer 3 computed pre-transposed: (2, TB) lane-dense result
            w3t = w3t_ref[...]
            out = (jax.lax.dot_general(w3t[:, :W], g1, _NT,
                                       preferred_element_type=jnp.float32)
                   + jax.lax.dot_general(w3t[:, W:], g2, _NT,
                                         preferred_element_type=jnp.float32)
                   + b3_ref[...])
            out_ref[...] = out
        return kernel

    # small widths: keep the block-diagonal (2W,2W) fusion (single MXU push).
    def kernel(s_ref, a_ref, w1s_ref, w1a_ref, b1_ref,
               w2_ref, b2_ref, w3t_ref, b3_ref, out_ref):
        s = s_ref[...].astype(jnp.bfloat16)
        a = a_ref[...].astype(jnp.bfloat16)
        h = (jnp.dot(s, w1s_ref[...], preferred_element_type=jnp.float32)
             + jnp.dot(a, w1a_ref[...], preferred_element_type=jnp.float32)
             + b1_ref[...])
        h = jnp.maximum(h, 0.0).astype(jnp.bfloat16)
        h = jnp.dot(h, w2_ref[...], preferred_element_type=jnp.float32) + b2_ref[...]
        h = jnp.maximum(h, 0.0).astype(jnp.bfloat16)
        out = jax.lax.dot_general(w3t_ref[...], h, _NT,
                                  preferred_element_type=jnp.float32) + b3_ref[...]
        out_ref[...] = out                      # (2, TB) lane-dense store
    return kernel


# ------------------------------ tiling ---------------------------------------

def _tb_cap(H2):
    """Cap batch-tile rows so the (TB, 2W) fp32 intermediate stays ~<=4 MiB."""
    cap = (4 << 20) // (4 * max(H2, 128))
    return max(256, min(2048, (cap // 128) * 128))


def _choose_tiling(B, *, multi_core, cap, force_steps=None):
    """Return (TB, B_pad). Single fat step when possible; minimal padding."""
    B8 = _round_up(max(B, 1), 8)
    steps = -(-B8 // cap)
    if multi_core and B8 >= 256:
        steps = max(steps, 2)                  # give both v7x TensorCores work
    if force_steps is not None:
        steps = force_steps
    if steps > 1 and (steps % 2) and multi_core:
        steps += 1                             # even split across the two TCs
    if steps == 1:
        return B8, B8                          # block == full batch dim
    TB = _round_up(-(-B8 // steps), 128)       # lane-dense (2, TB) store needs %128
    return TB, steps * TB


# ------------------------------ wrapper ---------------------------------------

def q_critic_forward(state, action, fused, *, force_steps=None):
    """Pallas implementation of Q_Critic.forward(state, action) -> (q1, q2)."""
    B, sd = state.shape
    ad = action.shape[1]
    H2 = fused["b1"].shape[1]                  # 2 * net_width
    W = H2 // 2
    split_l2 = "w2" not in fused

    TB, B_pad = _choose_tiling(B, multi_core=_is_v7x(), cap=_tb_cap(H2),
                               force_steps=force_steps)
    if B_pad != B:
        state = jnp.pad(state, ((0, B_pad - B), (0, 0)))
        action = jnp.pad(action, ((0, B_pad - B), (0, 0)))
    grid = (B_pad // TB,)

    kernel = _make_kernel(split_l2, W)

    def run(single_buffer_weights):
        def resident(shape):
            # constant block index -> weight fetched once, stays resident in VMEM
            kw = {}
            if single_buffer_weights:
                kw["pipeline_mode"] = pl.Buffered(1)   # no dead second buffer
            return pl.BlockSpec(shape, lambda i: (0,) * len(shape), **kw)

        w_specs = [resident((sd, H2)), resident((ad, H2)), resident((1, H2))]
        w_args = [fused["w1_s"], fused["w1_a"], fused["b1"]]
        if split_l2:
            w_specs += [resident((W, W)), resident((W, W))]
            w_args += [fused["w2a"], fused["w2b"]]
        else:
            w_specs += [resident((H2, H2))]
            w_args += [fused["w2"]]
        w_specs += [resident((1, H2)), resident((2, H2)), resident((2, 1))]
        w_args += [fused["b2"], fused["w3t"], fused["b3"]]

        return pl.pallas_call(
            kernel,
            out_shape=jax.ShapeDtypeStruct((2, B_pad), jnp.float32),
            grid=grid,
            in_specs=[pl.BlockSpec((TB, sd), lambda i: (i, 0)),   # state tile
                      pl.BlockSpec((TB, ad), lambda i: (i, 0))]   # action tile
                     + w_specs,
            out_specs=pl.BlockSpec((2, TB), lambda i: (0, i)),    # lane-dense
            compiler_params=pltpu.CompilerParams(
                dimension_semantics=("parallel",)),               # v7x megacore
        )(state, action, *w_args)

    try:
        out = run(single_buffer_weights=True)
    except Exception:
        # TODO(synk): this jax version rejects pl.Buffered(1) single-buffering
        # of resident weights; fall back to default double buffering.
        out = run(single_buffer_weights=False)

    q = out[:, :B]                              # (2, B)
    return q[0][:, None], q[1][:, None]         # (B, 1), (B, 1)


# --------------------------- parameter handling ------------------------------

def init_params(key, state_dim, action_dim, net_width):
    """Per-layer params matching the PyTorch module, stored as (in, out), f32."""
    d = state_dim + action_dim
    shapes = {
        "w1": (d, net_width),         "b1": (1, net_width),
        "w2": (net_width, net_width), "b2": (1, net_width),
        "w3": (net_width, 1),         "b3": (1, 1),
        "w4": (d, net_width),         "b4": (1, net_width),
        "w5": (net_width, net_width), "b5": (1, net_width),
        "w6": (net_width, 1),         "b6": (1, 1),
    }
    params = {}
    keys = jax.random.split(key, len(shapes))
    for k, (name, shp) in zip(keys, shapes.items()):
        fan_in = shp[0] if name.startswith("w") else shapes["w" + name[1:]][0]
        bound = 1.0 / jnp.sqrt(fan_in)
        params[name] = jax.random.uniform(k, shp, jnp.float32, -bound, bound)
    return params


def fuse_params(params, state_dim, net_width, weight_dtype=jnp.bfloat16,
                split_l2=None):
    """Fuse the twin heads; choose split vs block-diag layer 2 by width."""
    W = net_width
    if split_l2 is None:
        split_l2 = (2 * W) > _mxu_lane_tile()

    w1f = jnp.concatenate([params["w1"], params["w4"]], axis=1)       # (D, 2W)
    # layer 3 stored pre-transposed: (2, 2W); row0=[w3^T | 0], row1=[0 | w6^T]
    w3t = jnp.zeros((2, 2 * W), jnp.float32)
    w3t = w3t.at[0, :W].set(params["w3"][:, 0]).at[1, W:].set(params["w6"][:, 0])

    fused = {
        "w1_s": w1f[:state_dim].astype(weight_dtype),
        "w1_a": w1f[state_dim:].astype(weight_dtype),
        "b1": jnp.concatenate([params["b1"], params["b4"]], 1).astype(jnp.float32),
        "b2": jnp.concatenate([params["b2"], params["b5"]], 1).astype(jnp.float32),
        "w3t": w3t.astype(weight_dtype),
        "b3": jnp.concatenate([params["b3"], params["b6"]], 0).astype(jnp.float32),
    }
    if split_l2:
        fused["w2a"] = params["w2"].astype(weight_dtype)
        fused["w2b"] = params["w5"].astype(weight_dtype)
    else:
        w2f = jnp.zeros((2 * W, 2 * W), jnp.float32)
        w2f = w2f.at[:W, :W].set(params["w2"]).at[W:, W:].set(params["w5"])
        fused["w2"] = w2f.astype(weight_dtype)
    return fused


# ------------------------------ references -----------------------------------

def _reference_forward_f32(state, action, p):
    """Pure-JAX fp32 reference matching the PyTorch module exactly."""
    sa = jnp.concatenate([state, action], axis=1)
    h = jax.nn.relu(sa @ p["w1"] + p["b1"])
    h = jax.nn.relu(h @ p["w2"] + p["b2"])
    q1 = h @ p["w3"] + p["b3"]
    g = jax.nn.relu(sa @ p["w4"] + p["b4"])
    g = jax.nn.relu(g @ p["w5"] + p["b5"])
    q2 = g @ p["w6"] + p["b6"]
    return q1, q2


def _reference_forward_bf16(state, action, fp):
    """Pure-JAX reference replicating the kernel's bf16/f32 mixed precision."""
    s = state.astype(jnp.bfloat16)
    a = action.astype(jnp.bfloat16)
    h = (jnp.dot(s, fp["w1_s"], preferred_element_type=jnp.float32)
         + jnp.dot(a, fp["w1_a"], preferred_element_type=jnp.float32) + fp["b1"])
    h = jnp.maximum(h, 0.0).astype(jnp.bfloat16)
    if "w2" in fp:
        g = jnp.dot(h, fp["w2"], preferred_element_type=jnp.float32) + fp["b2"]
    else:
        W = fp["w2a"].shape[0]
        g = jnp.concatenate(
            [jnp.dot(h[:, :W], fp["w2a"], preferred_element_type=jnp.float32),
             jnp.dot(h[:, W:], fp["w2b"], preferred_element_type=jnp.float32)],
            axis=1) + fp["b2"]
    g = jnp.maximum(g, 0.0).astype(jnp.bfloat16)
    out = jnp.dot(g, fp["w3t"].T, preferred_element_type=jnp.float32) + fp["b3"].T
    return out[:, 0:1], out[:, 1:2]


def _check(q1, q2, state, action, params, fused):
    q1 = jax.block_until_ready(q1)
    q2 = jax.block_until_ready(q2)
    B = state.shape[0]
    assert q1.shape == (B, 1) and q2.shape == (B, 1)
    # tight check vs a reference mimicking the kernel's bf16/f32 precision
    q1_b, q2_b = _reference_forward_bf16(state, action, fused)
    assert jnp.allclose(q1, q1_b, atol=2e-3, rtol=2e-3)
    assert jnp.allclose(q2, q2_b, atol=2e-3, rtol=2e-3)
    # looser semantic check vs the exact fp32 PyTorch-equivalent math
    q1_r, q2_r = _reference_forward_f32(state, action, params)
    assert jnp.allclose(q1, q1_r, atol=5e-2, rtol=5e-2)
    assert jnp.allclose(q2, q2_r, atol=5e-2, rtol=5e-2)


# --------------------------------- main ---------------------------------------

if __name__ == "__main__":
    key = jax.random.PRNGKey(0)
    state_dim, action_dim = 12, 4

    # ---- config 1: tiny width -> fused block-diag layer 2, single grid step
    k_s, k_a, k_p, key = jax.random.split(key, 4)
    batch, net_width = 8, 32
    state = jax.random.normal(k_s, (batch, state_dim), jnp.float32)
    action = jax.random.normal(k_a, (batch, action_dim), jnp.float32)
    params = init_params(k_p, state_dim, action_dim, net_width)
    fused = fuse_params(params, state_dim, net_width)          # auto (fused here)
    q1, q2 = q_critic_forward(state, action, fused)
    _check(q1, q2, state, action, params, fused)

    # ---- config 2: force the split-layer-2 path (lane-aligned W=128)
    k_p2, key = jax.random.split(key, 2)
    net_width2 = 128
    params2 = init_params(k_p2, state_dim, action_dim, net_width2)
    fused2 = fuse_params(params2, state_dim, net_width2, split_l2=True)
    q1, q2 = q_critic_forward(state, action, fused2)
    _check(q1, q2, state, action, params2, fused2)

    # ---- config 3: multi-step grid + lane-dense (2, TB) tiled output store
    k_s3, k_a3, key = jax.random.split(key, 3)
    batch3 = 256
    state3 = jax.random.normal(k_s3, (batch3, state_dim), jnp.float32)
    action3 = jax.random.normal(k_a3, (batch3, action_dim), jnp.float32)
    q1, q2 = q_critic_forward(state3, action3, fused, force_steps=2)
    _check(q1, q2, state3, action3, params, fused)

    print("KERNEL_OK")
</pallas_src>

<mosaic_0001>
module attributes {stable_mosaic.version = 11 : i64} {
  func.func @kernel(%arg0: i32, %arg1: memref<8x12xf32, #tpu.memory_space<vmem>>, %arg2: memref<8x4xf32, #tpu.memory_space<vmem>>, %arg3: memref<12x64xbf16, #tpu.memory_space<vmem>>, %arg4: memref<4x64xbf16, #tpu.memory_space<vmem>>, %arg5: memref<1x64xf32, #tpu.memory_space<vmem>>, %arg6: memref<64x64xbf16, #tpu.memory_space<vmem>>, %arg7: memref<1x64xf32, #tpu.memory_space<vmem>>, %arg8: memref<2x64xbf16, #tpu.memory_space<vmem>>, %arg9: memref<2x1xf32, #tpu.memory_space<vmem>>, %arg10: memref<2x8xf32, #tpu.memory_space<vmem>>) attributes {dimension_semantics = [#tpu.dimension_semantics<parallel>], iteration_bounds = array<i64: 1>, scalar_prefetch = 0 : i64, scratch_operands = 0 : i64, tpu.core_type = #tpu.core_type<tc>, window_params = [{transform_indices = @transform_0, window_bounds = array<i64: 8, 12>}, {transform_indices = @transform_1, window_bounds = array<i64: 8, 4>}, {pipeline_mode = #tpu.pipeline_mode<synchronous>, transform_indices = @transform_2, window_bounds = array<i64: 12, 64>}, {pipeline_mode = #tpu.pipeline_mode<synchronous>, transform_indices = @transform_3, window_bounds = array<i64: 4, 64>}, {pipeline_mode = #tpu.pipeline_mode<synchronous>, transform_indices = @transform_4, window_bounds = array<i64: 1, 64>}, {pipeline_mode = #tpu.pipeline_mode<synchronous>, transform_indices = @transform_5, window_bounds = array<i64: 64, 64>}, {pipeline_mode = #tpu.pipeline_mode<synchronous>, transform_indices = @transform_6, window_bounds = array<i64: 1, 64>}, {pipeline_mode = #tpu.pipeline_mode<synchronous>, transform_indices = @transform_7, window_bounds = array<i64: 2, 64>}, {pipeline_mode = #tpu.pipeline_mode<synchronous>, transform_indices = @transform_8, window_bounds = array<i64: 2, 1>}, {transform_indices = @transform_9, window_bounds = array<i64: 2, 8>}]} {
    %c0 = arith.constant 0 : index
    %c0_0 = arith.constant 0 : index
    %0 = vector.load %arg1[%c0, %c0_0] : memref<8x12xf32, #tpu.memory_space<vmem>>, vector<8x12xf32>
    %1 = arith.truncf %0 : vector<8x12xf32> to vector<8x12xbf16>
    %c0_1 = arith.constant 0 : index
    %c0_2 = arith.constant 0 : index
    %2 = vector.load %arg2[%c0_1, %c0_2] : memref<8x4xf32, #tpu.memory_space<vmem>>, vector<8x4xf32>
    %3 = arith.truncf %2 : vector<8x4xf32> to vector<8x4xbf16>
    %c0_3 = arith.constant 0 : index
    %c0_4 = arith.constant 0 : index
    %4 = vector.load %arg3[%c0_3, %c0_4] : memref<12x64xbf16, #tpu.memory_space<vmem>>, vector<12x64xbf16>
    %cst = arith.constant dense<0.000000e+00> : vector<8x64xf32>
    %5 = tpu.matmul %1, %4, %cst {dimension_numbers = #tpu.dot_dimension_numbers<[1], [0], [0], [1], [0, 0, 1, 1], [], []>} : vector<8x12xbf16>, vector<12x64xbf16>, vector<8x64xf32> -> vector<8x64xf32>
    %c0_5 = arith.constant 0 : index
    %c0_6 = arith.constant 0 : index
    %6 = vector.load %arg4[%c0_5, %c0_6] : memref<4x64xbf16, #tpu.memory_space<vmem>>, vector<4x64xbf16>
    %cst_7 = arith.constant dense<0.000000e+00> : vector<8x64xf32>
    %7 = tpu.matmul %3, %6, %cst_7 {dimension_numbers = #tpu.dot_dimension_numbers<[1], [0], [0], [1], [0, 0, 1, 1], [], []>} : vector<8x4xbf16>, vector<4x64xbf16>, vector<8x64xf32> -> vector<8x64xf32>
    %8 = arith.addf %5, %7 : vector<8x64xf32>
    %c0_8 = arith.constant 0 : index
    %c0_9 = arith.constant 0 : index
    %9 = vector.load %arg5[%c0_8, %c0_9] : memref<1x64xf32, #tpu.memory_space<vmem>>, vector<1x64xf32>
    %10 = vector.broadcast %9 : vector<1x64xf32> to vector<8x64xf32>
    %11 = arith.addf %8, %10 : vector<8x64xf32>
    %cst_10 = arith.constant 0.000000e+00 : f32
    %12 = vector.broadcast %cst_10 : f32 to vector<8x64xf32>
    %13 = arith.maximumf %11, %12 : vector<8x64xf32>
    %14 = arith.truncf %13 : vector<8x64xf32> to vector<8x64xbf16>
    %c0_11 = arith.constant 0 : index
    %c0_12 = arith.constant 0 : index
    %15 = vector.load %arg6[%c0_11, %c0_12] : memref<64x64xbf16, #tpu.memory_space<vmem>>, vector<64x64xbf16>
    %cst_13 = arith.constant dense<0.000000e+00> : vector<8x64xf32>
    %16 = tpu.matmul %14, %15, %cst_13 {dimension_numbers = #tpu.dot_dimension_numbers<[1], [0], [0], [1], [0, 0, 1, 1], [], []>} : vector<8x64xbf16>, vector<64x64xbf16>, vector<8x64xf32> -> vector<8x64xf32>
    %c0_14 = arith.constant 0 : index
    %c0_15 = arith.constant 0 : index
    %17 = vector.load %arg7[%c0_14, %c0_15] : memref<1x64xf32, #tpu.memory_space<vmem>>, vector<1x64xf32>
    %18 = vector.broadcast %17 : vector<1x64xf32> to vector<8x64xf32>
    %19 = arith.addf %16, %18 : vector<8x64xf32>
    %cst_16 = arith.constant 0.000000e+00 : f32
    %20 = vector.broadcast %cst_16 : f32 to vector<8x64xf32>
    %21 = arith.maximumf %19, %20 : vector<8x64xf32>
    %22 = arith.truncf %21 : vector<8x64xf32> to vector<8x64xbf16>
    %c0_17 = arith.constant 0 : index
    %c0_18 = arith.constant 0 : index
    %23 = vector.load %arg8[%c0_17, %c0_18] : memref<2x64xbf16, #tpu.memory_space<vmem>>, vector<2x64xbf16>
    %cst_19 = arith.constant dense<0.000000e+00> : vector<2x8xf32>
    %24 = tpu.matmul %23, %22, %cst_19 {dimension_numbers = #tpu.dot_dimension_numbers<[1], [1], [0], [0], [0, 0, 1, 0], [], []>} : vector<2x64xbf16>, vector<8x64xbf16>, vector<2x8xf32> -> vector<2x8xf32>
    %c0_20 = arith.constant 0 : index
    %c0_21 = arith.constant 0 : index
    %25 = vector.load %arg9[%c0_20, %c0_21] : memref<2x1xf32, #tpu.memory_space<vmem>>, vector<2x1xf32>
    %26 = vector.broadcast %25 : vector<2x1xf32> to vector<2x8xf32>
    %27 = arith.addf %24, %26 : vector<2x8xf32>
    %c0_22 = arith.constant 0 : index
    %c0_23 = arith.constant 0 : index
    %28 = vector.load %arg10[%c0_22, %c0_23] : memref<2x8xf32, #tpu.memory_space<vmem>>, vector<2x8xf32>
    tpu.vector_store %arg10[%c0_22, %c0_23], %27 {strides = array<i32>} : memref<2x8xf32, #tpu.memory_space<vmem>>, vector<2x8xf32>,
    return
  }
  func.func @transform_0(%arg0: i32) -> (i32, i32) {
    %c0_i32 = arith.constant 0 : i32
    %c0_i32_0 = arith.constant 0 : i32
    return %arg0, %c0_i32 : i32, i32
  }
  func.func @transform_1(%arg0: i32) -> (i32, i32) {
    %c0_i32 = arith.constant 0 : i32
    %c0_i32_0 = arith.constant 0 : i32
    return %arg0, %c0_i32 : i32, i32
  }
  func.func @transform_2(%arg0: i32) -> (i32, i32) {
    %c0_i32 = arith.constant 0 : i32
    %c0_i32_0 = arith.constant 0 : i32
    %c0_i32_1 = arith.constant 0 : i32
    return %c0_i32, %c0_i32_0 : i32, i32
  }
  func.func @transform_3(%arg0: i32) -> (i32, i32) {
    %c0_i32 = arith.constant 0 : i32
    %c0_i32_0 = arith.constant 0 : i32
    %c0_i32_1 = arith.constant 0 : i32
    return %c0_i32, %c0_i32_0 : i32, i32
  }
  func.func @transform_4(%arg0: i32) -> (i32, i32) {
    %c0_i32 = arith.constant 0 : i32
    %c0_i32_0 = arith.constant 0 : i32
    %c0_i32_1 = arith.constant 0 : i32
    return %c0_i32, %c0_i32_0 : i32, i32
  }
  func.func @transform_5(%arg0: i32) -> (i32, i32) {
    %c0_i32 = arith.constant 0 : i32
    %c0_i32_0 = arith.constant 0 : i32
    %c0_i32_1 = arith.constant 0 : i32
    return %c0_i32, %c0_i32_0 : i32, i32
  }
  func.func @transform_6(%arg0: i32) -> (i32, i32) {
    %c0_i32 = arith.constant 0 : i32
    %c0_i32_0 = arith.constant 0 : i32
    %c0_i32_1 = arith.constant 0 : i32
    return %c0_i32, %c0_i32_0 : i32, i32
  }
  func.func @transform_7(%arg0: i32) -> (i32, i32) {
    %c0_i32 = arith.constant 0 : i32
    %c0_i32_0 = arith.constant 0 : i32
    %c0_i32_1 = arith.constant 0 : i32
    return %c0_i32, %c0_i32_0 : i32, i32
  }
  func.func @transform_8(%arg0: i32) -> (i32, i32) {
    %c0_i32 = arith.constant 0 : i32
    %c0_i32_0 = arith.constant 0 : i32
    %c0_i32_1 = arith.constant 0 : i32
    return %c0_i32, %c0_i32_0 : i32, i32
  }
  func.func @transform_9(%arg0: i32) -> (i32, i32) {
    %c0_i32 = arith.constant 0 : i32
    %c0_i32_0 = arith.constant 0 : i32
    return %c0_i32, %arg0 : i32, i32
  }
}

module attributes {stable_mosaic.version = 11 : i64} {
  func.func @kernel(%arg0: i32, %arg1: memref<8x12xf32, #tpu.memory_space<vmem>>, %arg2: memref<8x4xf32, #tpu.memory_space<vmem>>, %arg3: memref<12x64xbf16, #tpu.memory_space<vmem>>, %arg4: memref<4x64xbf16, #tpu.memory_space<vmem>>, %arg5: memref<1x64xf32, #tpu.memory_space<vmem>>, %arg6: memref<64x64xbf16, #tpu.memory_space<vmem>>, %arg7: memref<1x64xf32, #tpu.memory_space<vmem>>, %arg8: memref<2x64xbf16, #tpu.memory_space<vmem>>, %arg9: memref<2x1xf32, #tpu.memory_space<vmem>>, %arg10: memref<2x8xf32, #tpu.memory_space<vmem>>) attributes {dimension_semantics = [#tpu.dimension_semantics<parallel>], iteration_bounds = array<i64: 1>, scalar_prefetch = 0 : i64, scratch_operands = 0 : i64, tpu.core_type = #tpu.core_type<tc>, window_params = [{transform_indices = @transform_0, window_bounds = array<i64: 8, 12>}, {transform_indices = @transform_1, window_bounds = array<i64: 8, 4>}, {pipeline_mode = #tpu.pipeline_mode<synchronous>, transform_indices = @transform_2, window_bounds = array<i64: 12, 64>}, {pipeline_mode = #tpu.pipeline_mode<synchronous>, transform_indices = @transform_3, window_bounds = array<i64: 4, 64>}, {pipeline_mode = #tpu.pipeline_mode<synchronous>, transform_indices = @transform_4, window_bounds = array<i64: 1, 64>}, {pipeline_mode = #tpu.pipeline_mode<synchronous>, transform_indices = @transform_5, window_bounds = array<i64: 64, 64>}, {pipeline_mode = #tpu.pipeline_mode<synchronous>, transform_indices = @transform_6, window_bounds = array<i64: 1, 64>}, {pipeline_mode = #tpu.pipeline_mode<synchronous>, transform_indices = @transform_7, window_bounds = array<i64: 2, 64>}, {pipeline_mode = #tpu.pipeline_mode<synchronous>, transform_indices = @transform_8, window_bounds = array<i64: 2, 1>}, {transform_indices = @transform_9, window_bounds = array<i64: 2, 8>}]} {
    %c0 = arith.constant 0 : index
    %c0_0 = arith.constant 0 : index
    %0 = vector.load %arg1[%c0, %c0_0] : memref<8x12xf32, #tpu.memory_space<vmem>>, vector<8x12xf32>
    %1 = arith.truncf %0 : vector<8x12xf32> to vector<8x12xbf16>
    %c0_1 = arith.constant 0 : index
    %c0_2 = arith.constant 0 : index
    %2 = vector.load %arg2[%c0_1, %c0_2] : memref<8x4xf32, #tpu.memory_space<vmem>>, vector<8x4xf32>
    %3 = arith.truncf %2 : vector<8x4xf32> to vector<8x4xbf16>
    %c0_3 = arith.constant 0 : index
    %c0_4 = arith.constant 0 : index
    %4 = vector.load %arg3[%c0_3, %c0_4] : memref<12x64xbf16, #tpu.memory_space<vmem>>, vector<12x64xbf16>
    %cst = arith.constant dense<0.000000e+00> : vector<8x64xf32>
    %5 = tpu.matmul %1, %4, %cst {dimension_numbers = #tpu.dot_dimension_numbers<[1], [0], [0], [1], [0, 0, 1, 1], [], []>} : vector<8x12xbf16>, vector<12x64xbf16>, vector<8x64xf32> -> vector<8x64xf32>
    %c0_5 = arith.constant 0 : index
    %c0_6 = arith.constant 0 : index
    %6 = vector.load %arg4[%c0_5, %c0_6] : memref<4x64xbf16, #tpu.memory_space<vmem>>, vector<4x64xbf16>
    %cst_7 = arith.constant dense<0.000000e+00> : vector<8x64xf32>
    %7 = tpu.matmul %3, %6, %cst_7 {dimension_numbers = #tpu.dot_dimension_numbers<[1], [0], [0], [1], [0, 0, 1, 1], [], []>} : vector<8x4xbf16>, vector<4x64xbf16>, vector<8x64xf32> -> vector<8x64xf32>
    %8 = arith.addf %5, %7 : vector<8x64xf32>
    %c0_8 = arith.constant 0 : index
    %c0_9 = arith.constant 0 : index
    %9 = vector.load %arg5[%c0_8, %c0_9] : memref<1x64xf32, #tpu.memory_space<vmem>>, vector<1x64xf32>
    %10 = vector.broadcast %9 : vector<1x64xf32> to vector<8x64xf32>
    %11 = arith.addf %8, %10 : vector<8x64xf32>
    %cst_10 = arith.constant 0.000000e+00 : f32
    %12 = vector.broadcast %cst_10 : f32 to vector<8x64xf32>
    %13 = arith.maximumf %11, %12 : vector<8x64xf32>
    %14 = arith.truncf %13 : vector<8x64xf32> to vector<8x64xbf16>
    %c0_11 = arith.constant 0 : index
    %c0_12 = arith.constant 0 : index
    %15 = vector.load %arg6[%c0_11, %c0_12] : memref<64x64xbf16, #tpu.memory_space<vmem>>, vector<64x64xbf16>
    %cst_13 = arith.constant dense<0.000000e+00> : vector<8x64xf32>
    %16 = tpu.matmul %14, %15, %cst_13 {dimension_numbers = #tpu.dot_dimension_numbers<[1], [0], [0], [1], [0, 0, 1, 1], [], []>} : vector<8x64xbf16>, vector<64x64xbf16>, vector<8x64xf32> -> vector<8x64xf32>
    %c0_14 = arith.constant 0 : index
    %c0_15 = arith.constant 0 : index
    %17 = vector.load %arg7[%c0_14, %c0_15] : memref<1x64xf32, #tpu.memory_space<vmem>>, vector<1x64xf32>
    %18 = vector.broadcast %17 : vector<1x64xf32> to vector<8x64xf32>
    %19 = arith.addf %16, %18 : vector<8x64xf32>
    %cst_16 = arith.constant 0.000000e+00 : f32
    %20 = vector.broadcast %cst_16 : f32 to vector<8x64xf32>
    %21 = arith.maximumf %19, %20 : vector<8x64xf32>
    %22 = arith.truncf %21 : vector<8x64xf32> to vector<8x64xbf16>
    %c0_17 = arith.constant 0 : index
    %c0_18 = arith.constant 0 : index
    %23 = vector.load %arg8[%c0_17, %c0_18] : memref<2x64xbf16, #tpu.memory_space<vmem>>, vector<2x64xbf16>
    %cst_19 = arith.constant dense<0.000000e+00> : vector<2x8xf32>
    %24 = tpu.matmul %23, %22, %cst_19 {dimension_numbers = #tpu.dot_dimension_numbers<[1], [1], [0], [0], [0, 0, 1, 0], [], []>} : vector<2x64xbf16>, vector<8x64xbf16>, vector<2x8xf32> -> vector<2x8xf32>
    %c0_20 = arith.constant 0 : index
    %c0_21 = arith.constant 0 : index
    %25 = vector.load %arg9[%c0_20, %c0_21] : memref<2x1xf32, #tpu.memory_space<vmem>>, vector<2x1xf32>
    %26 = vector.broadcast %25 : vector<2x1xf32> to vector<2x8xf32>
    %27 = arith.addf %24, %26 : vector<2x8xf32>
    %c0_22 = arith.constant 0 : index
    %c0_23 = arith.constant 0 : index
    %28 = vector.load %arg10[%c0_22, %c0_23] : memref<2x8xf32, #tpu.memory_space<vmem>>, vector<2x8xf32>
    tpu.vector_store %arg10[%c0_22, %c0_23], %27 {strides = array<i32>} : memref<2x8xf32, #tpu.memory_space<vmem>>, vector<2x8xf32>,
    return
  }
  func.func @transform_0(%arg0: i32) -> (i32, i32) {
    %c0_i32 = arith.constant 0 : i32
    %c0_i32_0 = arith.constant 0 : i32
    return %arg0, %c0_i32 : i32, i32
  }
  func.func @transform_1(%arg0: i32) -> (i32, i32) {
    %c0_i32 = arith.constant 0 : i32
    %c0_i32_0 = arith.constant 0 : i32
    return %arg0, %c0_i32 : i32, i32
  }
  func.func @transform_2(%arg0: i32) -> (i32, i32) {
    %c0_i32 = arith.constant 0 : i32
    %c0_i32_0 = arith.constant 0 : i32
    %c0_i32_1 = arith.constant 0 : i32
    return %c0_i32, %c0_i32_0 : i32, i32
  }
  func.func @transform_3(%arg0: i32) -> (i32, i32) {
    %c0_i32 = arith.constant 0 : i32
    %c0_i32_0 = arith.constant 0 : i32
    %c0_i32_1 = arith.constant 0 : i32
    return %c0_i32, %c0_i32_0 : i32, i32
  }
  func.func @transform_4(%arg0: i32) -> (i32, i32) {
    %c0_i32 = arith.constant 0 : i32
    %c0_i32_0 = arith.constant 0 : i32
    %c0_i32_1 = arith.constant 0 : i32
    return %c0_i32, %c0_i32_0 : i32, i32
  }
  func.func @transform_5(%arg0: i32) -> (i32, i32) {
    %c0_i32 = arith.constant 0 : i32
    %c0_i32_0 = arith.constant 0 : i32
    %c0_i32_1 = arith.constant 0 : i32
    return %c0_i32, %c0_i32_0 : i32, i32
  }
  func.func @transform_6(%arg0: i32) -> (i32, i32) {
    %c0_i32 = arith.constant 0 : i32
    %c0_i32_0 = arith.constant 0 : i32
    %c0_i32_1 = arith.constant 0 : i32
    return %c0_i32, %c0_i32_0 : i32, i32
  }
  func.func @transform_7(%arg0: i32) -> (i32, i32) {
    %c0_i32 = arith.constant 0 : i32
    %c0_i32_0 = arith.constant 0 : i32
    %c0_i32_1 = arith.constant 0 : i32
    return %c0_i32, %c0_i32_0 : i32, i32
  }
  func.func @transform_8(%arg0: i32) -> (i32, i32) {
    %c0_i32 = arith.constant 0 : i32
    %c0_i32_0 = arith.constant 0 : i32
    %c0_i32_1 = arith.constant 0 : i32
    return %c0_i32, %c0_i32_0 : i32, i32
  }
  func.func @transform_9(%arg0: i32) -> (i32, i32) {
    %c0_i32 = arith.constant 0 : i32
    %c0_i32_0 = arith.constant 0 : i32
    return %c0_i32, %arg0 : i32, i32
  }
}

</mosaic_0001>

<bundles_post_ra>
// kernel: tpu_custom_call.1
= control target key start
LH: loop header
LB: loop body
LE: loop exit
PB: predicated region body
PF: predicated region fallthrough
CT: control target
= control target key end

     0   :  { %14 = vsyncpa [#allocation3], 0  ;;  %s647_s0 = inlined_call_operand.hbm [shape: f32[8,12], index: 0, kind: input, shape index: {}]   ;;  %s648_s1 = inlined_call_operand.vmem [shape: f32[8,4], index: 1, kind: input, shape index: {}]   ;;  %s649_s2 = inlined_call_operand.hbm [shape: bf16[12,64], index: 2, kind: input, shape index: {}]   ;;  %s650_s3 = inlined_call_operand.vmem [shape: bf16[4,64], index: 3, kind: input, shape index: {}]   ;;  %s651_s4 = inlined_call_operand.hbm [shape: f32[1,64], index: 4, kind: input, shape index: {}]   ;;  %s652_s5 = inlined_call_operand.vmem [shape: bf16[64,64], index: 5, kind: input, shape index: {}]   ;;  %s653_s6 = inlined_call_operand.vmem [shape: f32[1,64], index: 6, kind: input, shape index: {}]   ;;  %s654_s7 = inlined_call_operand.vmem [shape: bf16[2,64], index: 7, kind: input, shape index: {}]   ;;  %s655_s8 = inlined_call_operand.vmem [shape: f32[2,1], index: 8, kind: input, shape index: {}]   ;;  %s656_s9 = inlined_call_operand.hbm [shape: f32[2,8], index: 9, kind: output, shape index: {}]  }
   0x1   :  { %15 = vsyncpa [#allocation6], 0 }
   0x2   :  { %16 = vsyncpa [#allocation4], 0  ;;  %s506_s30 = smov [#allocation5]   ;;  %s412_s13 = scalar_lea.hbm %s649_s2, 128 }
   0x3   :  { %s34_s10 = sshll.u32 %s506_s30, 4  ;;  %p413_p0 = scmp.ne.s32.totalorder %s649_s2, %s412_s13  ;;  %s35_s10 = int_to_ptr.vmem [resolvable:$true] %s34_s10 }
   0x4   :  { %p416_p1 = scmp.lt.u32.totalorder %s412_s13, %s649_s2 }
   0x6   :  { %p418_p2 = pnand %p416_p1, %p413_p0 }
   0x8   :  { %421 = shalt.err (!%p418_p2)
}
   0x9   :  { %s422_s18 = scalar_lea.vmem %s35_s10, 128  ;;  %p427_p4 = scmp.lt.s32.totalorder %s35_s10, %s35_s10 }
   0xa   :  { %p423_p3 = scmp.ne.s32.totalorder %s35_s10, %s422_s18  ;;  %p428_p5 = scmp.lt.s32.totalorder %s422_s18, %s422_s18 }
   0xc   :  { %p429_p6 = por %p428_p5, %p427_p4 }
   0xe   :  { %p430_p7 = pnand %p429_p6, %p423_p3 }
  0x10   :  { %433 = shalt.err (!%p430_p7)
}
  0x11   :  { %s507_s19 = smov 64   ;;  %s508_s20 = smov 4  }
  0x12   :  { %40 = dma.hbm_to_vmem [thread:$0]  %s649_s2, 128, %s35_s10, [#allocation6], %s507_s19, %s507_s19, %s508_s20  }
  0x13   :  { %s509_s23 = smov [#allocation2]   ;;  %s510_s25 = smov [#allocation7]  }
  0x14   :  { %s23_s24 = sshll.u32 %s509_s23, 4  ;;  %s49_s26 = sshll.u32 %s510_s25, 4  ;;  %s24_s24 = int_to_ptr.vmem [resolvable:$true] %s23_s24  ;;  %s50_s26 = int_to_ptr.vmem [resolvable:$true] %s49_s26 }
  0x15   :  { %s434_s29 = scalar_lea.hbm %s647_s0, 128 }
  0x16   :  { %p435_p8 = scmp.ne.s32.totalorder %s647_s0, %s434_s29  ;;  %p438_p9 = scmp.lt.u32.totalorder %s434_s29, %s647_s0 }
  0x18   :  { %p440_p10 = pnand %p438_p9, %p435_p8 }
  0x1a   :  { %443 = shalt.err (!%p440_p10)
}
  0x1b   :  { %s444_s2 = scalar_lea.vmem %s24_s24, 128  ;;  %p449_p12 = scmp.lt.s32.totalorder %s24_s24, %s24_s24 }
  0x1c   :  { %p445_p11 = scmp.ne.s32.totalorder %s24_s24, %s444_s2  ;;  %p450_p13 = scmp.lt.s32.totalorder %s444_s2, %s444_s2 }
  0x1e   :  { %p451_p0 = por %p450_p13, %p449_p12 }
  0x20   :  { %p452_p1 = pnand %p451_p0, %p445_p11 }
  0x22   :  { %455 = shalt.err (!%p452_p1)
}
  0x23   :  { %26 = dma.hbm_to_vmem [thread:$0]  %s647_s0, 128, %s24_s24, [#allocation3]  }
  0x24   :  { %s456_s17 = scalar_lea.hbm %s651_s4, 16 }
  0x25   :  { %p457_p2 = scmp.ne.s32.totalorder %s651_s4, %s456_s17  ;;  %p460_p3 = scmp.lt.u32.totalorder %s456_s17, %s651_s4 }
  0x27   :  { %p462_p4 = pnand %p460_p3, %p457_p2 }
  0x29   :  { %465 = shalt.err (!%p462_p4)
}
  0x2a   :  { %s466_s22 = scalar_lea.vmem %s50_s26, 16  ;;  %s470_s23 = scalar_lea.vmem %s50_s26, 32 }
  0x2b   :  { %p467_p5 = scmp.ne.s32.totalorder %s50_s26, %s466_s22  ;;  %p471_p6 = scmp.lt.s32.totalorder %s50_s26, %s50_s26 }
  0x2c   :  { %p472_p7 = scmp.lt.s32.totalorder %s470_s23, %s466_s22 }
  0x2e   :  { %p473_p8 = por %p472_p7, %p471_p6 }
  0x30   :  { %p474_p9 = pnand %p473_p8, %p467_p5 }
  0x32   :  { %477 = shalt.err (!%p474_p9)
}
  0x33   :  { %52 = dma.hbm_to_vmem [thread:$0]  %s651_s4, 16, %s50_s26, [#allocation6]  }
  0x34   :  { %500 = dma.done.wait [#allocation3], 128  }
  0x35   :  { %501 = vsyncadd [#allocation3], 4294967168 }
  0x36   :  { %502 = dma.done.wait [#allocation6], 144  }
  0x37   :  { %503 = vsyncadd [#allocation6], 4294967152  ;;  %v511_v0 = vmov 0.0   ;;  %vm512_vm0 = vmmov 0   ;;  %vm82_vm1 = vcmask 1041408   ;;  %vm135_vm2 = vcmask 1045504  }
  0x38   :  { %367 = vmatprep.subr.bf16.mxu0 %v511_v0  ;;  %373 = vmatprep.subr.bf16.mxu1 %v511_v0  ;;  %v77_v1 = vld [vmem:[%s650_s3] sm:$0x3]  ;;  %v407_v3 = vld [vmem:[#allocation5] sm:$0x3f]   ;;  %vm78_vm3 = vcmask 31744   ;;  %vm131_vm4 = vcmask 97280  }
  0x39   :  { %369 = vmatprep.mubr.msk.bf16.mxu0 %vm512_vm0, %v511_v0  ;;  %375 = vmatprep.mubr.msk.bf16.mxu1 %vm512_vm0, %v511_v0  ;;  %v84_v2 = vsel %vm82_vm1, %v77_v1, 0  ;;  %v73_v4 = vld [vmem:[%s648_s1] sm:$0xff]  ;;  %v137_v8 = vsel %vm135_vm2, %v407_v3, 0  ;;  %v409_v10 = vld [vmem:[%s652_s5 + $0x8] sm:$0xff]   ;;  %v410_v11 = vld [vmem:[%s652_s5 + $0x10] sm:$0xff]   ;;  %vm228_vm5 = vcmask 523264  }
  0x3a   :  { %v71_v5 = vld [vmem:[#allocation2] sm:$0xff]  ;;  %368 = vmatpush3.bf16.msra.mxu0 %v84_v2  ;;  %v74_v6 = vpack.c.bf16 %v73_v4, %v73_v4  ;;  %374 = vmatpush3.bf16.msra.mxu1 %v137_v8  ;;  %v411_v12 = vld [vmem:[%s652_s5 + $0x18] sm:$0xff]   ;;  %v348_v17 = vld [vmem:[#allocation7] ss:$0 sm:$0xff]  ;;  %v513_v27 = vmov 0   ;;  %vm327_vm6 = vcmask 58368  }
  0x3b   :  { %v408_v7 = vld [vmem:[%s652_s5] sm:$0xff]   ;;  %v72_v9 = vpack.c.bf16 %v71_v5, %v71_v5  ;;  %379 = vmatprep.subr.bf16.mxu0 %v511_v0  ;;  %391 = vmatprep.subr.bf16.mxu1 %v511_v0 }
  0x3c   :  { %v275_v26 = vld [vmem:[%s655_s8] sm:$0x3]  ;;  %406 = vset.pattern.permute.xlu0 %v513_v27  ;;  %s514_s8 = smov [#allocation8]  }
  0x3d   :  { %370 = vmatmul.mubr.msk.bf16.vlgmr.msra.gmra.mrb[0].mxu0 %vm78_vm3, %v74_v6  ;;  %376 = vmatmul.mubr.msk.bf16.vlgmr.msra.gmra.mrb[0].mxu1 %vm131_vm4, %v72_v9  ;;  %v349_v28 = vld [vmem:[%s653_s6] ss:$0 sm:$0xff]  ;;  %s335_s17 = sshll.u32 %s514_s8, 4  ;;  %s336_s17 = int_to_ptr.vmem [resolvable:$true] %s335_s17 }
  0x3e   :  { %380 = vmatpush3.bf16.msra.mxu0 %v408_v7  ;;  %387 = vmatprep.mubr.msk.bf16.mxu0 %vm512_vm0, %v511_v0  ;;  %v274_v37 = vld [vmem:[%s654_s7] sm:$0x1]  ;;  %s478_s6 = scalar_lea.vmem %s336_s17, 32  ;;  %p483_p11 = scmp.lt.s32.totalorder %s336_s17, %s336_s17 }
  0x3f   :  { %381 = vmatprep.subr.bf16.mxu0 %v511_v0  ;;  %393 = vmatprep.mubr.msk.bf16.mxu1 %vm512_vm0, %v511_v0  ;;  %p479_p10 = scmp.ne.s32.totalorder %s336_s17, %s478_s6  ;;  %p484_p12 = scmp.lt.s32.totalorder %s478_s6, %s478_s6 }
  0x40   :  { %278 = vperm.xlu0 %406, %v275_v26  }
  0x41   :  { %p485_p13 = por %p484_p12, %p483_p11 }
  0x42   :  { %382 = vmatpush3.bf16.msra.mxu0 %v409_v10 }
  0x43   :  { %383 = vmatprep.subr.bf16.mxu0 %v511_v0  ;;  %p486_p0 = pnand %p485_p13, %p479_p10 }
  0x46   :  { %384 = vmatpush3.bf16.msra.mxu0 %v410_v11 }
  0x47   :  { %385 = vmatprep.subr.bf16.mxu0 %v511_v0 }
  0x4a   :  { %386 = vmatpush3.bf16.msra.mxu0 %v411_v12 }
  0xbf   :  { %v279_v38 = vpop.permute.xlu0 %278 }
 0x110   :  { %v120_v13 = vpop.f32.mrb[0].mxu0  ;;  %v173_v16 = vpop.f32.mrb[0].mxu1 }
 0x111   :  { %v371_v14 = vpop.f32.mrb[1].mxu0  ;;  %v174_v18 = vadd.f32 %v173_v16, %v120_v13  ;;  %v377_v20 = vpop.f32.mrb[1].mxu1 }
 0x112   :  { %v123_v15 = vpop.f32.mrb[2].mxu0  ;;  %v176_v21 = vpop.f32.mrb[2].mxu1 }
 0x113   :  { %v372_v19 = vpop.f32.mrb[3].mxu0  ;;  %v186_v22 = vadd.f32 %v348_v17, %v174_v18  ;;  %v378_v23 = vpop.f32.mrb[3].mxu1 }
 0x115   :  { %v187_v24 = vmax.f32 %v186_v22, 0.0 }
 0x117   :  { %v188_v25 = vpack.c.bf16 %v187_v24, %v187_v24 }
 0x119   :  { %388 = vmatmul.mubr.msk.bf16.vlgmr.msra.gmra.mrb[4].mxu0 %vm228_vm5, %v188_v25 }
 0x1ec   :  { %v266_v29 = vpop.f32.mrb[4].mxu0 }
 0x1ed   :  { %v267_v30 = vadd.f32 %v349_v28, %v266_v29  ;;  %v389_v31 = vpop.f32.mrb[5].mxu0 }
 0x1ee   :  { %v269_v32 = vpop.f32.mrb[6].mxu0 }
 0x1ef   :  { %v272_v33 = vmax.f32 %v267_v30, 0.0  ;;  %v390_v34 = vpop.f32.mrb[7].mxu0 }
 0x1f1   :  { %v273_v35 = vpack.c.bf16 %v272_v33, %v272_v33 }
 0x1f3   :  { %v285_v36 = vsel %vm228_vm5, %v273_v35, 0 }
 0x1f4   :  { %392 = vmatpush3.bf16.xpose.msra.mxu1 %v285_v36 }
 0x1fb   :  { %394 = vmatmul.mubr.msk.bf16.vlgmr.msra.gmra.mrb[4].mxu1 %vm228_vm5, %v274_v37 }
 0x2ce   :  { %v321_v39 = vpop.f32.mrb[4].mxu1 }
 0x2cf   :  { %v322_v40 = vadd.f32 %v321_v39, %v279_v38  ;;  %v395_v41 = vpop.f32.mrb[5].mxu1 }
 0x2d0   :  { %v324_v42 = vpop.f32.mrb[6].mxu1 }
 0x2d1   :  { %v396_v43 = vpop.f32.mrb[7].mxu1  ;;  %328 = vst.msk [vmem:[#allocation8] sm:$0x3] %vm327_vm6, %v322_v40 }
 0x2d2   :  { %489 = shalt.err (!%p486_p0)
}
 0x2d3   :  { %s490_s19 = scalar_lea.hbm %s656_s9, 32 }
 0x2d4   :  { %p491_p1 = scmp.ne.s32.totalorder %s656_s9, %s490_s19  ;;  %p494_p2 = scmp.lt.u32.totalorder %s490_s19, %s656_s9 }
 0x2d6   :  { %p496_p3 = pnand %p494_p2, %p491_p1 }
 0x2d8   :  { %499 = shalt.err (!%p496_p3)
}
 0x2d9   :  { %338 = dma.vmem_to_hbm [thread:$0]  %s336_s17, 32, %s656_s9, [#allocation4]  }
 0x2da   :  { %504 = dma.done.wait [#allocation4], 32  }
 0x2db   :  { %505 = vsyncadd [#allocation4], 4294967264 }
 0x2dc   :  { %342 = vsyncpa [#allocation3], 1 }
 0x2dd   :  { %343 = vsyncpa [#allocation6], 1 }
 0x2de   :  { %344 = vsyncpa [#allocation4], 1 }

// kernel: tpu_custom_call.1
= control target key start
LH: loop header
LB: loop body
LE: loop exit
PB: predicated region body
PF: predicated region fallthrough
CT: control target
= control target key end

     0   :  { %14 = vsyncpa [#allocation3], 0  ;;  %s647_s0 = inlined_call_operand.hbm [shape: f32[8,12], index: 0, kind: input, shape index: {}]   ;;  %s648_s1 = inlined_call_operand.vmem [shape: f32[8,4], index: 1, kind: input, shape index: {}]   ;;  %s649_s2 = inlined_call_operand.hbm [shape: bf16[12,64], index: 2, kind: input, shape index: {}]   ;;  %s650_s3 = inlined_call_operand.vmem [shape: bf16[4,64], index: 3, kind: input, shape index: {}]   ;;  %s651_s4 = inlined_call_operand.hbm [shape: f32[1,64], index: 4, kind: input, shape index: {}]   ;;  %s652_s5 = inlined_call_operand.vmem [shape: bf16[64,64], index: 5, kind: input, shape index: {}]   ;;  %s653_s6 = inlined_call_operand.vmem [shape: f32[1,64], index: 6, kind: input, shape index: {}]   ;;  %s654_s7 = inlined_call_operand.vmem [shape: bf16[2,64], index: 7, kind: input, shape index: {}]   ;;  %s655_s8 = inlined_call_operand.vmem [shape: f32[2,1], index: 8, kind: input, shape index: {}]   ;;  %s656_s9 = inlined_call_operand.hbm [shape: f32[2,8], index: 9, kind: output, shape index: {}]  }
   0x1   :  { %15 = vsyncpa [#allocation6], 0 }
   0x2   :  { %16 = vsyncpa [#allocation4], 0  ;;  %s506_s30 = smov [#allocation5]   ;;  %s412_s13 = scalar_lea.hbm %s649_s2, 128 }
   0x3   :  { %s34_s10 = sshll.u32 %s506_s30, 4  ;;  %p413_p0 = scmp.ne.s32.totalorder %s649_s2, %s412_s13  ;;  %s35_s10 = int_to_ptr.vmem [resolvable:$true] %s34_s10 }
   0x4   :  { %p416_p1 = scmp.lt.u32.totalorder %s412_s13, %s649_s2 }
   0x6   :  { %p418_p2 = pnand %p416_p1, %p413_p0 }
   0x8   :  { %421 = shalt.err (!%p418_p2)
}
   0x9   :  { %s422_s18 = scalar_lea.vmem %s35_s10, 128  ;;  %p427_p4 = scmp.lt.s32.totalorder %s35_s10, %s35_s10 }
   0xa   :  { %p423_p3 = scmp.ne.s32.totalorder %s35_s10, %s422_s18  ;;  %p428_p5 = scmp.lt.s32.totalorder %s422_s18, %s422_s18 }
   0xc   :  { %p429_p6 = por %p428_p5, %p427_p4 }
   0xe   :  { %p430_p7 = pnand %p429_p6, %p423_p3 }
  0x10   :  { %433 = shalt.err (!%p430_p7)
}
  0x11   :  { %s507_s19 = smov 64   ;;  %s508_s20 = smov 4  }
  0x12   :  { %40 = dma.hbm_to_vmem [thread:$0]  %s649_s2, 128, %s35_s10, [#allocation6], %s507_s19, %s507_s19, %s508_s20  }
  0x13   :  { %s509_s23 = smov [#allocation2]   ;;  %s510_s25 = smov [#allocation7]  }
  0x14   :  { %s23_s24 = sshll.u32 %s509_s23, 4  ;;  %s49_s26 = sshll.u32 %s510_s25, 4  ;;  %s24_s24 = int_to_ptr.vmem [resolvable:$true] %s23_s24  ;;  %s50_s26 = int_to_ptr.vmem [resolvable:$true] %s49_s26 }
  0x15   :  { %s434_s29 = scalar_lea.hbm %s647_s0, 128 }
  0x16   :  { %p435_p8 = scmp.ne.s32.totalorder %s647_s0, %s434_s29  ;;  %p438_p9 = scmp.lt.u32.totalorder %s434_s29, %s647_s0 }
  0x18   :  { %p440_p10 = pnand %p438_p9, %p435_p8 }
  0x1a   :  { %443 = shalt.err (!%p440_p10)
}
  0x1b   :  { %s444_s2 = scalar_lea.vmem %s24_s24, 128  ;;  %p449_p12 = scmp.lt.s32.totalorder %s24_s24, %s24_s24 }
  0x1c   :  { %p445_p11 = scmp.ne.s32.totalorder %s24_s24, %s444_s2  ;;  %p450_p13 = scmp.lt.s32.totalorder %s444_s2, %s444_s2 }
  0x1e   :  { %p451_p0 = por %p450_p13, %p449_p12 }
  0x20   :  { %p452_p1 = pnand %p451_p0, %p445_p11 }
  0x22   :  { %455 = shalt.err (!%p452_p1)
}
  0x23   :  { %26 = dma.hbm_to_vmem [thread:$0]  %s647_s0, 128, %s24_s24, [#allocation3]  }
  0x24   :  { %s456_s17 = scalar_lea.hbm %s651_s4, 16 }
  0x25   :  { %p457_p2 = scmp.ne.s32.totalorder %s651_s4, %s456_s17  ;;  %p460_p3 = scmp.lt.u32.totalorder %s456_s17, %s651_s4 }
  0x27   :  { %p462_p4 = pnand %p460_p3, %p457_p2 }
  0x29   :  { %465 = shalt.err (!%p462_p4)
}
  0x2a   :  { %s466_s22 = scalar_lea.vmem %s50_s26, 16  ;;  %s470_s23 = scalar_lea.vmem %s50_s26, 32 }
  0x2b   :  { %p467_p5 = scmp.ne.s32.totalorder %s50_s26, %s466_s22  ;;  %p471_p6 = scmp.lt.s32.totalorder %s50_s26, %s50_s26 }
  0x2c   :  { %p472_p7 = scmp.lt.s32.totalorder %s470_s23, %s466_s22 }
  0x2e   :  { %p473_p8 = por %p472_p7, %p471_p6 }
  0x30   :  { %p474_p9 = pnand %p473_p8, %p467_p5 }
  0x32   :  { %477 = shalt.err (!%p474_p9)
}
  0x33   :  { %52 = dma.hbm_to_vmem [thread:$0]  %s651_s4, 16, %s50_s26, [#allocation6]  }
  0x34   :  { %500 = dma.done.wait [#allocation3], 128  }
  0x35   :  { %501 = vsyncadd [#allocation3], 4294967168 }
  0x36   :  { %502 = dma.done.wait [#allocation6], 144  }
  0x37   :  { %503 = vsyncadd [#allocation6], 4294967152  ;;  %v511_v0 = vmov 0.0   ;;  %vm512_vm0 = vmmov 0   ;;  %vm82_vm1 = vcmask 1041408   ;;  %vm135_vm2 = vcmask 1045504  }
  0x38   :  { %367 = vmatprep.subr.bf16.mxu0 %v511_v0  ;;  %373 = vmatprep.subr.bf16.mxu1 %v511_v0  ;;  %v77_v1 = vld [vmem:[%s650_s3] sm:$0x3]  ;;  %v407_v3 = vld [vmem:[#allocation5] sm:$0x3f]   ;;  %vm78_vm3 = vcmask 31744   ;;  %vm131_vm4 = vcmask 97280  }
  0x39   :  { %369 = vmatprep.mubr.msk.bf16.mxu0 %vm512_vm0, %v511_v0  ;;  %375 = vmatprep.mubr.msk.bf16.mxu1 %vm512_vm0, %v511_v0  ;;  %v84_v2 = vsel %vm82_vm1, %v77_v1, 0  ;;  %v73_v4 = vld [vmem:[%s648_s1] sm:$0xff]  ;;  %v137_v8 = vsel %vm135_vm2, %v407_v3, 0  ;;  %v409_v10 = vld [vmem:[%s652_s5 + $0x8] sm:$0xff]   ;;  %v410_v11 = vld [vmem:[%s652_s5 + $0x10] sm:$0xff]   ;;  %vm228_vm5 = vcmask 523264  }
  0x3a   :  { %v71_v5 = vld [vmem:[#allocation2] sm:$0xff]  ;;  %368 = vmatpush3.bf16.msra.mxu0 %v84_v2  ;;  %v74_v6 = vpack.c.bf16 %v73_v4, %v73_v4  ;;  %374 = vmatpush3.bf16.msra.mxu1 %v137_v8  ;;  %v411_v12 = vld [vmem:[%s652_s5 + $0x18] sm:$0xff]   ;;  %v348_v17 = vld [vmem:[#allocation7] ss:$0 sm:$0xff]  ;;  %v513_v27 = vmov 0   ;;  %vm327_vm6 = vcmask 58368  }
  0x3b   :  { %v408_v7 = vld [vmem:[%s652_s5] sm:$0xff]   ;;  %v72_v9 = vpack.c.bf16 %v71_v5, %v71_v5  ;;  %379 = vmatprep.subr.bf16.mxu0 %v511_v0  ;;  %391 = vmatprep.subr.bf16.mxu1 %v511_v0 }
  0x3c   :  { %v275_v26 = vld [vmem:[%s655_s8] sm:$0x3]  ;;  %406 = vset.pattern.permute.xlu0 %v513_v27  ;;  %s514_s8 = smov [#allocation8]  }
  0x3d   :  { %370 = vmatmul.mubr.msk.bf16.vlgmr.msra.gmra.mrb[0].mxu0 %vm78_vm3, %v74_v6  ;;  %376 = vmatmul.mubr.msk.bf16.vlgmr.msra.gmra.mrb[0].mxu1 %vm131_vm4, %v72_v9  ;;  %v349_v28 = vld [vmem:[%s653_s6] ss:$0 sm:$0xff]  ;;  %s335_s17 = sshll.u32 %s514_s8, 4  ;;  %s336_s17 = int_to_ptr.vmem [resolvable:$true] %s335_s17 }
  0x3e   :  { %380 = vmatpush3.bf16.msra.mxu0 %v408_v7  ;;  %387 = vmatprep.mubr.msk.bf16.mxu0 %vm512_vm0, %v511_v0  ;;  %v274_v37 = vld [vmem:[%s654_s7] sm:$0x1]  ;;  %s478_s6 = scalar_lea.vmem %s336_s17, 32  ;;  %p483_p11 = scmp.lt.s32.totalorder %s336_s17, %s336_s17 }
  0x3f   :  { %381 = vmatprep.subr.bf16.mxu0 %v511_v0  ;;  %393 = vmatprep.mubr.msk.bf16.mxu1 %vm512_vm0, %v511_v0  ;;  %p479_p10 = scmp.ne.s32.totalorder %s336_s17, %s478_s6  ;;  %p484_p12 = scmp.lt.s32.totalorder %s478_s6, %s478_s6 }
  0x40   :  { %278 = vperm.xlu0 %406, %v275_v26  }
  0x41   :  { %p485_p13 = por %p484_p12, %p483_p11 }
  0x42   :  { %382 = vmatpush3.bf16.msra.mxu0 %v409_v10 }
  0x43   :  { %383 = vmatprep.subr.bf16.mxu0 %v511_v0  ;;  %p486_p0 = pnand %p485_p13, %p479_p10 }
  0x46   :  { %384 = vmatpush3.bf16.msra.mxu0 %v410_v11 }
  0x47   :  { %385 = vmatprep.subr.bf16.mxu0 %v511_v0 }
  0x4a   :  { %386 = vmatpush3.bf16.msra.mxu0 %v411_v12 }
  0xbf   :  { %v279_v38 = vpop.permute.xlu0 %278 }
 0x110   :  { %v120_v13 = vpop.f32.mrb[0].mxu0  ;;  %v173_v16 = vpop.f32.mrb[0].mxu1 }
 0x111   :  { %v371_v14 = vpop.f32.mrb[1].mxu0  ;;  %v174_v18 = vadd.f32 %v173_v16, %v120_v13  ;;  %v377_v20 = vpop.f32.mrb[1].mxu1 }
 0x112   :  { %v123_v15 = vpop.f32.mrb[2].mxu0  ;;  %v176_v21 = vpop.f32.mrb[2].mxu1 }
 0x113   :  { %v372_v19 = vpop.f32.mrb[3].mxu0  ;;  %v186_v22 = vadd.f32 %v348_v17, %v174_v18  ;;  %v378_v23 = vpop.f32.mrb[3].mxu1 }
 0x115   :  { %v187_v24 = vmax.f32 %v186_v22, 0.0 }
 0x117   :  { %v188_v25 = vpack.c.bf16 %v187_v24, %v187_v24 }
 0x119   :  { %388 = vmatmul.mubr.msk.bf16.vlgmr.msra.gmra.mrb[4].mxu0 %vm228_vm5, %v188_v25 }
 0x1ec   :  { %v266_v29 = vpop.f32.mrb[4].mxu0 }
 0x1ed   :  { %v267_v30 = vadd.f32 %v349_v28, %v266_v29  ;;  %v389_v31 = vpop.f32.mrb[5].mxu0 }
 0x1ee   :  { %v269_v32 = vpop.f32.mrb[6].mxu0 }
 0x1ef   :  { %v272_v33 = vmax.f32 %v267_v30, 0.0  ;;  %v390_v34 = vpop.f32.mrb[7].mxu0 }
 0x1f1   :  { %v273_v35 = vpack.c.bf16 %v272_v33, %v272_v33 }
 0x1f3   :  { %v285_v36 = vsel %vm228_vm5, %v273_v35, 0 }
 0x1f4   :  { %392 = vmatpush3.bf16.xpose.msra.mxu1 %v285_v36 }
 0x1fb   :  { %394 = vmatmul.mubr.msk.bf16.vlgmr.msra.gmra.mrb[4].mxu1 %vm228_vm5, %v274_v37 }
 0x2ce   :  { %v321_v39 = vpop.f32.mrb[4].mxu1 }
 0x2cf   :  { %v322_v40 = vadd.f32 %v321_v39, %v279_v38  ;;  %v395_v41 = vpop.f32.mrb[5].mxu1 }
 0x2d0   :  { %v324_v42 = vpop.f32.mrb[6].mxu1 }
 0x2d1   :  { %v396_v43 = vpop.f32.mrb[7].mxu1  ;;  %328 = vst.msk [vmem:[#allocation8] sm:$0x3] %vm327_vm6, %v322_v40 }
 0x2d2   :  { %489 = shalt.err (!%p486_p0)
}
 0x2d3   :  { %s490_s19 = scalar_lea.hbm %s656_s9, 32 }
 0x2d4   :  { %p491_p1 = scmp.ne.s32.totalorder %s656_s9, %s490_s19  ;;  %p494_p2 = scmp.lt.u32.totalorder %s490_s19, %s656_s9 }
 0x2d6   :  { %p496_p3 = pnand %p494_p2, %p491_p1 }
 0x2d8   :  { %499 = shalt.err (!%p496_p3)
}
 0x2d9   :  { %338 = dma.vmem_to_hbm [thread:$0]  %s336_s17, 32, %s656_s9, [#allocation4]  }
 0x2da   :  { %504 = dma.done.wait [#allocation4], 32  }
 0x2db   :  { %505 = vsyncadd [#allocation4], 4294967264 }
 0x2dc   :  { %342 = vsyncpa [#allocation3], 1 }
 0x2dd   :  { %343 = vsyncpa [#allocation6], 1 }
 0x2de   :  { %344 = vsyncpa [#allocation4], 1 }

</bundles_post_ra>
